<compile_context>
chip_gen: v7x
topology: tpu7x:2x2x1
jax: 0.10.0
libtpu: 0.0.40
codegen_flags: <defaults>
</compile_context>

<pallas_src>
import jax
import jax.numpy as jnp
from jax import lax
from jax.experimental import pallas as pl
from jax.experimental.pallas import tpu as pltpu


# ------------------------------- Pallas kernel -------------------------------

def _pde_loss_kernel(params_ref,   # SMEM (8*B,) f32: [f0,kappa,alpha,sig0,sig1,dt,dx,0] per batch
                     masks_ref,    # VMEM (4, L) f32 lane masks, L = 2*S
                     u0i_ref,      # VMEM (bb, 1, L)  u0 interleaved with zeros
                     w_ref,        # VMEM (bb, T, L)  interleaved [u0,z0,u1,z1,...]
                     ic_ref,       # out  (bb, 1, L) f32 per-batch IC partial
                     bc_ref,       # out  (bb, 1, L) f32 per-batch BC partial
                     r_ref):       # out  (bb, 1, L) f32 per-batch residual partial
    bb, T, L = w_ref.shape
    bi = pl.program_id(0)

    m_r_even = masks_ref[0:1, :]   # interior x, even (u) lanes -> r1
    m_r_odd = masks_ref[1:2, :]    # interior x, odd (z) lanes  -> r2
    m_ic = masks_ref[2:3, :]       # all even (u) lanes
    m_bc = masks_ref[3:4, :]       # boundary even (u) lanes

    for ib in range(bb):           # static unroll over batch sub-block
        g = bi * bb + ib           # global batch index
        f0 = params_ref[8 * g + 0]
        kappa = params_ref[8 * g + 1]
        # alpha = params_ref[8 * g + 2]  # TODO(synk): nonlinearity of injected f_r (unused)
        sig0 = params_ref[8 * g + 3]
        sig1 = params_ref[8 * g + 4]
        dt = params_ref[8 * g + 5]
        dx = params_ref[8 * g + 6]

        gamma2 = (2.0 * f0) * (2.0 * f0)
        kappa2 = kappa * kappa
        inv2dt = 0.5 / dt
        invdx2 = 1.0 / (dx * dx)
        invdx4 = invdx2 * invdx2

        # Interior time rows 1..T-2 via shifted VMEM reads (no sublane rolls).
        w_prv = w_ref[ib, pl.ds(0, T - 2), :].astype(jnp.float32)   # rows 0..T-3
        w_mid = w_ref[ib, pl.ds(1, T - 2), :].astype(jnp.float32)   # rows 1..T-2
        w_nxt = w_ref[ib, pl.ds(2, T - 2), :].astype(jnp.float32)   # rows 2..T-1
        w_t = (w_nxt - w_prv) * inv2dt                              # u_t @even, z_t @odd

        # Lane rolls, explicitly shared.  Wrap-around lanes are masked out.
        # TODO(synk): pltpu.roll would be a single XLU rotate per shift, but its
        # lane-rotate lowering wants 128-multiple lane dims; jnp.roll kept for
        # shape robustness.
        w_m2 = jnp.roll(w_mid, 2, axis=1)
        w_p2 = jnp.roll(w_mid, -2, axis=1)
        w_m4 = jnp.roll(w_mid, 4, axis=1)
        w_p4 = jnp.roll(w_mid, -4, axis=1)

        w_xx = (w_p2 - 2.0 * w_mid + w_m2) * invdx2                 # u_xx @even, z_xx @odd
        w_x4 = (w_p4 - 4.0 * w_p2 + 6.0 * w_mid
                - 4.0 * w_m2 + w_m4) * invdx4                       # u_xxxx @even

        z_at_even = jnp.roll(w_mid, -1, axis=1)                     # even lane 2j -> z_j
        uxx_at_odd = jnp.roll(w_xx, 1, axis=1)                      # odd lane 2j+1 -> u_xx_j
        ux4_at_odd = jnp.roll(w_x4, 1, axis=1)                      # odd lane 2j+1 -> u_xxxx_j

        # TODO(synk): bow/hammer excitation forcing of the injected f_r omitted.
        r1 = w_t - z_at_even                                        # valid on even lanes
        r2 = (w_t - gamma2 * uxx_at_odd + kappa2 * ux4_at_odd
              + 2.0 * sig0 * w_mid - 2.0 * sig1 * w_xx)             # valid on odd lanes

        res = m_r_even * r1 + m_r_odd * r2                          # disjoint 0/1 masks
        r_ref[ib] = jnp.sum(res * res, axis=0, keepdims=True)       # (1, L)

        # Initial condition: first time row (even lanes) vs interleaved u0.
        row0 = w_ref[ib, 0:1, :].astype(jnp.float32)
        ic_err = m_ic * (row0 - u0i_ref[ib].astype(jnp.float32))
        ic_ref[ib] = ic_err * ic_err

        # Dirichlet boundary: boundary u lanes over all T rows, reusing loads.
        row_last = w_ref[ib, T - 1:T, :].astype(jnp.float32)
        bc_mid = jnp.sum((m_bc * w_mid) * w_mid, axis=0, keepdims=True)
        bc_ref[ib] = bc_mid + m_bc * (row0 * row0 + row_last * row_last)


# --------------------------------- Wrapper -----------------------------------

def pde_loss_pallas(pde_preds, u0, f0, kappa, alpha, sig0, sig1,
                    bow_mask, hammer_mask, bow_params, hammer_params,
                    xt, tt, w_ic=1.0, w_bc=1.0, w_r=1.0):
    """Fused Pallas implementation of pde_loss (f_ic + f_bc + f_r)."""
    del bow_mask, hammer_mask, bow_params, hammer_params  # TODO(synk): used only by the unspecified injected f_r
    B, T, S, C = pde_preds.shape
    assert C == 2
    assert T > 2 and S > 4, "residual normalisation assumes T > 2 and S > 4"
    L = 2 * S

    # Free view: (B,T,S,2) -> (B,T,2S); u/z stay interleaved in lanes, so no
    # strided channel split (no extra HBM copy) before the kernel.
    w_all = pde_preds.reshape(B, T, L)

    dt = (tt[1] - tt[0]).astype(jnp.float32)   # uniform-grid assumption
    dx = (xt[1] - xt[0]).astype(jnp.float32)

    def to_b(v):
        return jnp.broadcast_to(jnp.asarray(v, jnp.float32).reshape(-1), (B,))

    params = jnp.stack(
        [to_b(f0), to_b(kappa), to_b(alpha), to_b(sig0), to_b(sig1),
         jnp.broadcast_to(dt, (B,)), jnp.broadcast_to(dx, (B,)),
         jnp.zeros((B,), jnp.float32)],
        axis=1).reshape(-1).astype(jnp.float32)              # (8B,) -> 1-D SMEM

    # Precomputed 0/1 lane masks (built once, resident in VMEM).
    xi = jnp.arange(S)
    interior_x = ((xi >= 2) & (xi <= S - 3)).astype(jnp.float32)
    zeros_s = jnp.zeros((S,), jnp.float32)
    ones_s = jnp.ones((S,), jnp.float32)
    bc_x = jnp.zeros((S,), jnp.float32).at[0].set(1.0).at[S - 1].set(1.0)

    def interleave(even, odd):
        return jnp.stack([even, odd], axis=-1).reshape(L)

    masks = jnp.stack([
        interleave(interior_x, zeros_s),   # r1 on even (u) lanes, interior x
        interleave(zeros_s, interior_x),   # r2 on odd (z) lanes, interior x
        interleave(ones_s, zeros_s),       # IC on all even lanes
        interleave(bc_x, zeros_s),         # BC on boundary even lanes
    ], axis=0)                             # (4, L)

    u0i = jnp.stack([u0.astype(jnp.float32),
                     jnp.zeros((B, S), jnp.float32)], axis=-1).reshape(B, 1, L)

    # Batch sub-block so each grid step moves a reasonable amount of data.
    plane_bytes = T * L * jnp.dtype(pde_preds.dtype).itemsize
    bb = 1
    for cand in (8, 4, 2):
        if B % cand == 0 and cand * plane_bytes <= (4 << 20):
            bb = cand
            break

    # Explicit VMEM budget (v7x has 64 MiB physical, v5e scoped default 16 MiB).
    # TODO(synk): add a T-tiling grid axis (with 1-2 row halo) if T*L*4 grows
    # beyond a few MiB per plane.
    vmem_limit = int(min(100 << 20, max(32 << 20, 16 * bb * T * L * 4)))

    ic_p, bc_p, r_p = pl.pallas_call(
        _pde_loss_kernel,
        out_shape=(
            jax.ShapeDtypeStruct((B, 1, L), jnp.float32),
            jax.ShapeDtypeStruct((B, 1, L), jnp.float32),
            jax.ShapeDtypeStruct((B, 1, L), jnp.float32),
        ),
        grid_spec=pltpu.PrefetchScalarGridSpec(
            num_scalar_prefetch=0,
            grid=(B // bb,),
            in_specs=[
                pl.BlockSpec(memory_space=pltpu.MemorySpace.SMEM),
                pl.BlockSpec((4, L), lambda bi: (0, 0)),
                pl.BlockSpec((bb, 1, L), lambda bi: (bi, 0, 0)),
                pl.BlockSpec((bb, T, L), lambda bi: (bi, 0, 0)),
            ],
            out_specs=(
                pl.BlockSpec((bb, 1, L), lambda bi: (bi, 0, 0)),
                pl.BlockSpec((bb, 1, L), lambda bi: (bi, 0, 0)),
                pl.BlockSpec((bb, 1, L), lambda bi: (bi, 0, 0)),
            ),
        ),
        compiler_params=pltpu.CompilerParams(
            dimension_semantics=("parallel",),
            vmem_limit_bytes=vmem_limit),
    )(params, masks, u0i, w_all)

    val_ic = jnp.sum(ic_p) / (B * S)
    val_bc = jnp.sum(bc_p) / (B * T * 2)
    val_r = jnp.sum(r_p) / (B * (T - 2) * (S - 4))
    loss = w_ic * val_ic + w_bc * val_bc + w_r * val_r
    results = {"val_ic": val_ic, "val_bc": val_bc, "val_r": val_r}
    return loss, results


class PDELoss:
    """Pallas port of PDELoss.forward (f_ic / f_bc / f_r fused into one kernel)."""

    def __init__(self, w_ic=1.0, w_bc=1.0, w_r=1.0):
        self.w_ic, self.w_bc, self.w_r = w_ic, w_bc, w_r

    def __call__(self, pde_preds, u0, f0, kappa, alpha, sig0, sig1,
                 bow_mask, hammer_mask,
                 x_B, v_B, F_B, ph0_B, ph1_B, wid_B,
                 x_H, v_H, u_H, w_H, M_H, a_H,
                 xt, tt):
        bp = [x_B, v_B, F_B, ph0_B, ph1_B, wid_B]
        hp = [x_H, v_H, u_H, w_H, M_H, a_H]
        return pde_loss_pallas(pde_preds, u0, f0, kappa, alpha, sig0, sig1,
                               bow_mask, hammer_mask, bp, hp, xt, tt,
                               self.w_ic, self.w_bc, self.w_r)


# ------------------------------ Pure-JAX reference ---------------------------

def _pde_loss_ref(pde_preds, u0, f0, kappa, alpha, sig0, sig1, xt, tt,
                  w_ic=1.0, w_bc=1.0, w_r=1.0):
    del alpha
    ut = pde_preds[..., 0].astype(jnp.float32)
    zt = pde_preds[..., 1].astype(jnp.float32)
    B, T, S = ut.shape
    dt = (tt[1] - tt[0]).astype(jnp.float32)
    dx = (xt[1] - xt[0]).astype(jnp.float32)

    val_ic = jnp.mean((ut[:, 0, :] - u0.astype(jnp.float32)) ** 2)
    val_bc = jnp.sum(ut[:, :, 0] ** 2 + ut[:, :, -1] ** 2) / (B * T * 2)

    f0 = jnp.broadcast_to(jnp.asarray(f0, jnp.float32).reshape(-1), (B,))
    kappa = jnp.broadcast_to(jnp.asarray(kappa, jnp.float32).reshape(-1), (B,))
    sig0 = jnp.broadcast_to(jnp.asarray(sig0, jnp.float32).reshape(-1), (B,))
    sig1 = jnp.broadcast_to(jnp.asarray(sig1, jnp.float32).reshape(-1), (B,))

    gamma2 = ((2.0 * f0) * (2.0 * f0))[:, None, None]
    kappa2 = (kappa * kappa)[:, None, None]
    s0 = sig0[:, None, None]
    s1 = sig1[:, None, None]
    inv2dt = 0.5 / dt
    invdx2 = 1.0 / (dx * dx)
    invdx4 = invdx2 * invdx2

    u_t = (jnp.roll(ut, -1, 1) - jnp.roll(ut, 1, 1)) * inv2dt
    z_t = (jnp.roll(zt, -1, 1) - jnp.roll(zt, 1, 1)) * inv2dt
    u_xx = (jnp.roll(ut, -1, 2) - 2.0 * ut + jnp.roll(ut, 1, 2)) * invdx2
    z_xx = (jnp.roll(zt, -1, 2) - 2.0 * zt + jnp.roll(zt, 1, 2)) * invdx2
    u_xxxx = (jnp.roll(ut, -2, 2) - 4.0 * jnp.roll(ut, -1, 2) + 6.0 * ut
              - 4.0 * jnp.roll(ut, 1, 2) + jnp.roll(ut, 2, 2)) * invdx4

    r1 = u_t - zt
    r2 = z_t - gamma2 * u_xx + kappa2 * u_xxxx + 2.0 * s0 * zt - 2.0 * s1 * z_xx

    ti = jnp.arange(T)[None, :, None]
    xi = jnp.arange(S)[None, None, :]
    interior = (ti >= 1) & (ti <= T - 2) & (xi >= 2) & (xi <= S - 3)
    val_r = (jnp.sum(jnp.where(interior, r1 * r1 + r2 * r2, 0.0))
             / (B * (T - 2) * (S - 4)))

    loss = w_ic * val_ic + w_bc * val_bc + w_r * val_r
    return loss, {"val_ic": val_ic, "val_bc": val_bc, "val_r": val_r}


# ----------------------------------- Demo ------------------------------------

if __name__ == "__main__":
    key = jax.random.PRNGKey(0)
    ks = jax.random.split(key, 10)
    B, T, S = 2, 16, 32

    pde_preds = 0.1 * jax.random.normal(ks[0], (B, T, S, 2), jnp.float32)
    u0 = 0.1 * jax.random.normal(ks[1], (B, S), jnp.float32)
    f0 = jax.random.uniform(ks[2], (B,), jnp.float32, 1.0, 3.0)
    kappa = jax.random.uniform(ks[3], (B,), jnp.float32, 0.005, 0.02)
    alpha = jax.random.uniform(ks[4], (B,), jnp.float32, 1.0, 3.0)
    sig0 = jax.random.uniform(ks[5], (B,), jnp.float32, 0.0, 1.0)
    sig1 = jax.random.uniform(ks[6], (B,), jnp.float32, 0.0, 0.01)

    bow_mask = jnp.zeros((B,), jnp.float32)
    hammer_mask = jnp.ones((B,), jnp.float32)
    bow_params = [jax.random.normal(ks[7], (B,), jnp.float32) for _ in range(6)]
    hammer_params = [jax.random.normal(ks[8], (B,), jnp.float32) for _ in range(6)]

    xt = jnp.linspace(0.0, 1.0, S, dtype=jnp.float32)
    tt = jnp.linspace(0.0, 1.0, T, dtype=jnp.float32)

    model = PDELoss(w_ic=1.0, w_bc=1.0, w_r=1.0)
    loss, results = model(pde_preds, u0, f0, kappa, alpha, sig0, sig1,
                          bow_mask, hammer_mask,
                          *bow_params, *hammer_params, xt, tt)
    loss = jax.block_until_ready(loss)

    ref_loss, ref_results = _pde_loss_ref(pde_preds, u0, f0, kappa, alpha,
                                          sig0, sig1, xt, tt)

    assert jnp.allclose(loss, ref_loss, rtol=5e-4, atol=1e-6), (loss, ref_loss)
    for name in results:
        assert jnp.allclose(results[name], ref_results[name],
                            rtol=5e-4, atol=1e-6), (name, results[name],
                                                    ref_results[name])

    print("KERNEL_OK")
</pallas_src>

<mosaic_0001>
module attributes {stable_mosaic.version = 11 : i64} {
  func.func @_pde_loss_kernel(%arg0: i32, %arg1: memref<16xf32, #tpu.memory_space<smem>>, %arg2: memref<4x64xf32, #tpu.memory_space<vmem>>, %arg3: memref<2x1x64xf32, #tpu.memory_space<vmem>>, %arg4: memref<2x16x64xf32, #tpu.memory_space<vmem>>, %arg5: memref<2x1x64xf32, #tpu.memory_space<vmem>>, %arg6: memref<2x1x64xf32, #tpu.memory_space<vmem>>, %arg7: memref<2x1x64xf32, #tpu.memory_space<vmem>>) attributes {dimension_semantics = [#tpu.dimension_semantics<parallel>], iteration_bounds = array<i64: 1>, scalar_prefetch = 0 : i64, scratch_operands = 0 : i64, tpu.core_type = #tpu.core_type<tc>, window_params = [{transform_indices = @transform_0, window_bounds = array<i64: 16>}, {pipeline_mode = #tpu.pipeline_mode<synchronous>, transform_indices = @transform_1, window_bounds = array<i64: 4, 64>}, {transform_indices = @transform_2, window_bounds = array<i64: 2, 1, 64>}, {transform_indices = @transform_3, window_bounds = array<i64: 2, 16, 64>}, {transform_indices = @transform_4, window_bounds = array<i64: 2, 1, 64>}, {transform_indices = @transform_5, window_bounds = array<i64: 2, 1, 64>}, {transform_indices = @transform_6, window_bounds = array<i64: 2, 1, 64>}]} {
    %c0 = arith.constant 0 : index
    %c0_0 = arith.constant 0 : index
    %0 = vector.load %arg2[%c0, %c0_0] : memref<4x64xf32, #tpu.memory_space<vmem>>, vector<1x64xf32>
    %c1 = arith.constant 1 : index
    %c0_1 = arith.constant 0 : index
    %1 = vector.load %arg2[%c1, %c0_1] : memref<4x64xf32, #tpu.memory_space<vmem>>, vector<1x64xf32>
    %c2 = arith.constant 2 : index
    %c0_2 = arith.constant 0 : index
    %2 = vector.load %arg2[%c2, %c0_2] : memref<4x64xf32, #tpu.memory_space<vmem>>, vector<1x64xf32>
    %c3 = arith.constant 3 : index
    %c0_3 = arith.constant 0 : index
    %3 = vector.load %arg2[%c3, %c0_3] : memref<4x64xf32, #tpu.memory_space<vmem>>, vector<1x64xf32>
    %c2_i32 = arith.constant 2 : i32
    %4 = arith.muli %arg0, %c2_i32 : i32
    %c0_i32 = arith.constant 0 : i32
    %5 = arith.addi %4, %c0_i32 : i32
    %c8_i32 = arith.constant 8 : i32
    %6 = arith.muli %c8_i32, %5 : i32
    %c0_i32_4 = arith.constant 0 : i32
    %7 = arith.addi %6, %c0_i32_4 : i32
    %8 = arith.index_cast %7 : i32 to index
    %9 = memref.load %arg1[%8] : memref<16xf32, #tpu.memory_space<smem>>
    %c8_i32_5 = arith.constant 8 : i32
    %10 = arith.muli %c8_i32_5, %5 : i32
    %c1_i32 = arith.constant 1 : i32
    %11 = arith.addi %10, %c1_i32 : i32
    %12 = arith.index_cast %11 : i32 to index
    %13 = memref.load %arg1[%12] : memref<16xf32, #tpu.memory_space<smem>>
    %c8_i32_6 = arith.constant 8 : i32
    %14 = arith.muli %c8_i32_6, %5 : i32
    %c3_i32 = arith.constant 3 : i32
    %15 = arith.addi %14, %c3_i32 : i32
    %16 = arith.index_cast %15 : i32 to index
    %17 = memref.load %arg1[%16] : memref<16xf32, #tpu.memory_space<smem>>
    %c8_i32_7 = arith.constant 8 : i32
    %18 = arith.muli %c8_i32_7, %5 : i32
    %c4_i32 = arith.constant 4 : i32
    %19 = arith.addi %18, %c4_i32 : i32
    %20 = arith.index_cast %19 : i32 to index
    %21 = memref.load %arg1[%20] : memref<16xf32, #tpu.memory_space<smem>>
    %c8_i32_8 = arith.constant 8 : i32
    %22 = arith.muli %c8_i32_8, %5 : i32
    %c5_i32 = arith.constant 5 : i32
    %23 = arith.addi %22, %c5_i32 : i32
    %24 = arith.index_cast %23 : i32 to index
    %25 = memref.load %arg1[%24] : memref<16xf32, #tpu.memory_space<smem>>
    %c8_i32_9 = arith.constant 8 : i32
    %26 = arith.muli %c8_i32_9, %5 : i32
    %c6_i32 = arith.constant 6 : i32
    %27 = arith.addi %26, %c6_i32 : i32
    %28 = arith.index_cast %27 : i32 to index
    %29 = memref.load %arg1[%28] : memref<16xf32, #tpu.memory_space<smem>>
    %cst = arith.constant 2.000000e+00 : f32
    %30 = arith.mulf %cst, %9 : f32
    %cst_10 = arith.constant 2.000000e+00 : f32
    %31 = arith.mulf %cst_10, %9 : f32
    %32 = arith.mulf %30, %31 : f32
    %33 = arith.mulf %13, %13 : f32
    %cst_11 = arith.constant 5.000000e-01 : f32
    %34 = arith.divf %cst_11, %25 : f32
    %35 = arith.mulf %29, %29 : f32
    %cst_12 = arith.constant 1.000000e+00 : f32
    %36 = arith.divf %cst_12, %35 : f32
    %37 = arith.mulf %36, %36 : f32
    %c0_13 = arith.constant 0 : index
    %c0_14 = arith.constant 0 : index
    %c0_15 = arith.constant 0 : index
    %38 = vector.load %arg4[%c0_13, %c0_14, %c0_15] : memref<2x16x64xf32, #tpu.memory_space<vmem>>, vector<1x14x64xf32>
    %39 = vector.shape_cast %38 : vector<1x14x64xf32> to vector<14x64xf32>
    %c0_16 = arith.constant 0 : index
    %c1_17 = arith.constant 1 : index
    %c0_18 = arith.constant 0 : index
    %40 = vector.load %arg4[%c0_16, %c1_17, %c0_18] : memref<2x16x64xf32, #tpu.memory_space<vmem>>, vector<1x14x64xf32>
    %41 = vector.shape_cast %40 : vector<1x14x64xf32> to vector<14x64xf32>
    %c0_19 = arith.constant 0 : index
    %c2_20 = arith.constant 2 : index
    %c0_21 = arith.constant 0 : index
    %42 = vector.load %arg4[%c0_19, %c2_20, %c0_21] : memref<2x16x64xf32, #tpu.memory_space<vmem>>, vector<1x14x64xf32>
    %43 = vector.shape_cast %42 : vector<1x14x64xf32> to vector<14x64xf32>
    %44 = arith.subf %43, %39 : vector<14x64xf32>
    %45 = vector.broadcast %34 : f32 to vector<14x64xf32>
    %46 = arith.mulf %44, %45 : vector<14x64xf32>
    %47 = vector.extract_strided_slice %41 {offsets = [0, 62], sizes = [14, 2], strides = [1, 1]} : vector<14x64xf32> to vector<14x2xf32>
    %48 = vector.extract_strided_slice %41 {offsets = [0, 0], sizes = [14, 62], strides = [1, 1]} : vector<14x64xf32> to vector<14x62xf32>
    %49 = tpu.concatenate %47, %48 in 1 : vector<14x2xf32>, vector<14x62xf32> -> vector<14x64xf32>
    %50 = vector.extract_strided_slice %41 {offsets = [0, 2], sizes = [14, 62], strides = [1, 1]} : vector<14x64xf32> to vector<14x62xf32>
    %51 = vector.extract_strided_slice %41 {offsets = [0, 0], sizes = [14, 2], strides = [1, 1]} : vector<14x64xf32> to vector<14x2xf32>
    %52 = tpu.concatenate %50, %51 in 1 : vector<14x62xf32>, vector<14x2xf32> -> vector<14x64xf32>
    %53 = vector.extract_strided_slice %41 {offsets = [0, 60], sizes = [14, 4], strides = [1, 1]} : vector<14x64xf32> to vector<14x4xf32>
    %54 = vector.extract_strided_slice %41 {offsets = [0, 0], sizes = [14, 60], strides = [1, 1]} : vector<14x64xf32> to vector<14x60xf32>
    %55 = tpu.concatenate %53, %54 in 1 : vector<14x4xf32>, vector<14x60xf32> -> vector<14x64xf32>
    %56 = vector.extract_strided_slice %41 {offsets = [0, 4], sizes = [14, 60], strides = [1, 1]} : vector<14x64xf32> to vector<14x60xf32>
    %57 = vector.extract_strided_slice %41 {offsets = [0, 0], sizes = [14, 4], strides = [1, 1]} : vector<14x64xf32> to vector<14x4xf32>
    %58 = tpu.concatenate %56, %57 in 1 : vector<14x60xf32>, vector<14x4xf32> -> vector<14x64xf32>
    %cst_22 = arith.constant 2.000000e+00 : f32
    %59 = vector.broadcast %cst_22 : f32 to vector<14x64xf32>
    %60 = arith.mulf %59, %41 : vector<14x64xf32>
    %61 = arith.subf %52, %60 : vector<14x64xf32>
    %62 = arith.addf %61, %49 : vector<14x64xf32>
    %63 = vector.broadcast %36 : f32 to vector<14x64xf32>
    %64 = arith.mulf %62, %63 : vector<14x64xf32>
    %cst_23 = arith.constant 4.000000e+00 : f32
    %65 = vector.broadcast %cst_23 : f32 to vector<14x64xf32>
    %66 = arith.mulf %65, %52 : vector<14x64xf32>
    %67 = arith.subf %58, %66 : vector<14x64xf32>
    %cst_24 = arith.constant 6.000000e+00 : f32
    %68 = vector.broadcast %cst_24 : f32 to vector<14x64xf32>
    %69 = arith.mulf %68, %41 : vector<14x64xf32>
    %70 = arith.addf %67, %69 : vector<14x64xf32>
    %cst_25 = arith.constant 4.000000e+00 : f32
    %71 = vector.broadcast %cst_25 : f32 to vector<14x64xf32>
    %72 = arith.mulf %71, %49 : vector<14x64xf32>
    %73 = arith.subf %70, %72 : vector<14x64xf32>
    %74 = arith.addf %73, %55 : vector<14x64xf32>
    %75 = vector.broadcast %37 : f32 to vector<14x64xf32>
    %76 = arith.mulf %74, %75 : vector<14x64xf32>
    %77 = vector.extract_strided_slice %41 {offsets = [0, 1], sizes = [14, 63], strides = [1, 1]} : vector<14x64xf32> to vector<14x63xf32>
    %78 = vector.extract_strided_slice %41 {offsets = [0, 0], sizes = [14, 1], strides = [1, 1]} : vector<14x64xf32> to vector<14x1xf32>
    %79 = tpu.concatenate %77, %78 in 1 : vector<14x63xf32>, vector<14x1xf32> -> vector<14x64xf32>
    %80 = vector.extract_strided_slice %64 {offsets = [0, 63], sizes = [14, 1], strides = [1, 1]} : vector<14x64xf32> to vector<14x1xf32>
    %81 = vector.extract_strided_slice %64 {offsets = [0, 0], sizes = [14, 63], strides = [1, 1]} : vector<14x64xf32> to vector<14x63xf32>
    %82 = tpu.concatenate %80, %81 in 1 : vector<14x1xf32>, vector<14x63xf32> -> vector<14x64xf32>
    %83 = vector.extract_strided_slice %76 {offsets = [0, 63], sizes = [14, 1], strides = [1, 1]} : vector<14x64xf32> to vector<14x1xf32>
    %84 = vector.extract_strided_slice %76 {offsets = [0, 0], sizes = [14, 63], strides = [1, 1]} : vector<14x64xf32> to vector<14x63xf32>
    %85 = tpu.concatenate %83, %84 in 1 : vector<14x1xf32>, vector<14x63xf32> -> vector<14x64xf32>
    %86 = arith.subf %46, %79 : vector<14x64xf32>
    %87 = vector.broadcast %32 : f32 to vector<14x64xf32>
    %88 = arith.mulf %87, %82 : vector<14x64xf32>
    %89 = arith.subf %46, %88 : vector<14x64xf32>
    %90 = vector.broadcast %33 : f32 to vector<14x64xf32>
    %91 = arith.mulf %90, %85 : vector<14x64xf32>
    %92 = arith.addf %89, %91 : vector<14x64xf32>
    %cst_26 = arith.constant 2.000000e+00 : f32
    %93 = arith.mulf %cst_26, %17 : f32
    %94 = vector.broadcast %93 : f32 to vector<14x64xf32>
    %95 = arith.mulf %94, %41 : vector<14x64xf32>
    %96 = arith.addf %92, %95 : vector<14x64xf32>
    %cst_27 = arith.constant 2.000000e+00 : f32
    %97 = arith.mulf %cst_27, %21 : f32
    %98 = vector.broadcast %97 : f32 to vector<14x64xf32>
    %99 = arith.mulf %98, %64 : vector<14x64xf32>
    %100 = arith.subf %96, %99 : vector<14x64xf32>
    %101 = vector.broadcast %0 : vector<1x64xf32> to vector<14x64xf32>
    %102 = arith.mulf %101, %86 : vector<14x64xf32>
    %103 = vector.broadcast %1 : vector<1x64xf32> to vector<14x64xf32>
    %104 = arith.mulf %103, %100 : vector<14x64xf32>
    %105 = arith.addf %102, %104 : vector<14x64xf32>
    %106 = arith.mulf %105, %105 : vector<14x64xf32>
    %cst_28 = arith.constant dense<0.000000e+00> : vector<64xf32>
    %107 = vector.multi_reduction <add>, %106, %cst_28 [0] : vector<14x64xf32> to vector<64xf32>
    %108 = vector.shape_cast %107 : vector<64xf32> to vector<1x64xf32>
    %c0_29 = arith.constant 0 : index
    %c0_30 = arith.constant 0 : index
    %c0_31 = arith.constant 0 : index
    %109 = vector.load %arg7[%c0_29, %c0_30, %c0_31] : memref<2x1x64xf32, #tpu.memory_space<vmem>>, vector<1x1x64xf32>
    %110 = vector.shape_cast %109 : vector<1x1x64xf32> to vector<1x64xf32>
    %111 = vector.shape_cast %108 : vector<1x64xf32> to vector<1x1x64xf32>
    tpu.vector_store %arg7[%c0_29, %c0_30, %c0_31], %111 {strides = array<i32>} : memref<2x1x64xf32, #tpu.memory_space<vmem>>, vector<1x1x64xf32>,
    %c0_32 = arith.constant 0 : index
    %c0_33 = arith.constant 0 : index
    %c0_34 = arith.constant 0 : index
    %112 = vector.load %arg4[%c0_32, %c0_33, %c0_34] : memref<2x16x64xf32, #tpu.memory_space<vmem>>, vector<1x1x64xf32>
    %113 = vector.shape_cast %112 : vector<1x1x64xf32> to vector<1x64xf32>
    %c0_35 = arith.constant 0 : index
    %c0_36 = arith.constant 0 : index
    %c0_37 = arith.constant 0 : index
    %114 = vector.load %arg3[%c0_35, %c0_36, %c0_37] : memref<2x1x64xf32, #tpu.memory_space<vmem>>, vector<1x1x64xf32>
    %115 = vector.shape_cast %114 : vector<1x1x64xf32> to vector<1x64xf32>
    %116 = arith.subf %113, %115 : vector<1x64xf32>
    %117 = arith.mulf %2, %116 : vector<1x64xf32>
    %118 = arith.mulf %117, %117 : vector<1x64xf32>
    %c0_38 = arith.constant 0 : index
    %c0_39 = arith.constant 0 : index
    %c0_40 = arith.constant 0 : index
    %119 = vector.load %arg5[%c0_38, %c0_39, %c0_40] : memref<2x1x64xf32, #tpu.memory_space<vmem>>, vector<1x1x64xf32>
    %120 = vector.shape_cast %119 : vector<1x1x64xf32> to vector<1x64xf32>
    %121 = vector.shape_cast %118 : vector<1x64xf32> to vector<1x1x64xf32>
    tpu.vector_store %arg5[%c0_38, %c0_39, %c0_40], %121 {strides = array<i32>} : memref<2x1x64xf32, #tpu.memory_space<vmem>>, vector<1x1x64xf32>,
    %c0_41 = arith.constant 0 : index
    %c15 = arith.constant 15 : index
    %c0_42 = arith.constant 0 : index
    %122 = vector.load %arg4[%c0_41, %c15, %c0_42] : memref<2x16x64xf32, #tpu.memory_space<vmem>>, vector<1x1x64xf32>
    %123 = vector.shape_cast %122 : vector<1x1x64xf32> to vector<1x64xf32>
    %124 = vector.broadcast %3 : vector<1x64xf32> to vector<14x64xf32>
    %125 = arith.mulf %124, %41 : vector<14x64xf32>
    %126 = arith.mulf %125, %41 : vector<14x64xf32>
    %cst_43 = arith.constant dense<0.000000e+00> : vector<64xf32>
    %127 = vector.multi_reduction <add>, %126, %cst_43 [0] : vector<14x64xf32> to vector<64xf32>
    %128 = vector.shape_cast %127 : vector<64xf32> to vector<1x64xf32>
    %129 = arith.mulf %113, %113 : vector<1x64xf32>
    %130 = arith.mulf %123, %123 : vector<1x64xf32>
    %131 = arith.addf %129, %130 : vector<1x64xf32>
    %132 = arith.mulf %3, %131 : vector<1x64xf32>
    %133 = arith.addf %128, %132 : vector<1x64xf32>
    %c0_44 = arith.constant 0 : index
    %c0_45 = arith.constant 0 : index
    %c0_46 = arith.constant 0 : index
    %134 = vector.load %arg6[%c0_44, %c0_45, %c0_46] : memref<2x1x64xf32, #tpu.memory_space<vmem>>, vector<1x1x64xf32>
    %135 = vector.shape_cast %134 : vector<1x1x64xf32> to vector<1x64xf32>
    %136 = vector.shape_cast %133 : vector<1x64xf32> to vector<1x1x64xf32>
    tpu.vector_store %arg6[%c0_44, %c0_45, %c0_46], %136 {strides = array<i32>} : memref<2x1x64xf32, #tpu.memory_space<vmem>>, vector<1x1x64xf32>,
    %c2_i32_47 = arith.constant 2 : i32
    %137 = arith.muli %arg0, %c2_i32_47 : i32
    %c1_i32_48 = arith.constant 1 : i32
    %138 = arith.addi %137, %c1_i32_48 : i32
    %c8_i32_49 = arith.constant 8 : i32
    %139 = arith.muli %c8_i32_49, %138 : i32
    %c0_i32_50 = arith.constant 0 : i32
    %140 = arith.addi %139, %c0_i32_50 : i32
    %141 = arith.index_cast %140 : i32 to index
    %142 = memref.load %arg1[%141] : memref<16xf32, #tpu.memory_space<smem>>
    %c8_i32_51 = arith.constant 8 : i32
    %143 = arith.muli %c8_i32_51, %138 : i32
    %c1_i32_52 = arith.constant 1 : i32
    %144 = arith.addi %143, %c1_i32_52 : i32
    %145 = arith.index_cast %144 : i32 to index
    %146 = memref.load %arg1[%145] : memref<16xf32, #tpu.memory_space<smem>>
    %c8_i32_53 = arith.constant 8 : i32
    %147 = arith.muli %c8_i32_53, %138 : i32
    %c3_i32_54 = arith.constant 3 : i32
    %148 = arith.addi %147, %c3_i32_54 : i32
    %149 = arith.index_cast %148 : i32 to index
    %150 = memref.load %arg1[%149] : memref<16xf32, #tpu.memory_space<smem>>
    %c8_i32_55 = arith.constant 8 : i32
    %151 = arith.muli %c8_i32_55, %138 : i32
    %c4_i32_56 = arith.constant 4 : i32
    %152 = arith.addi %151, %c4_i32_56 : i32
    %153 = arith.index_cast %152 : i32 to index
    %154 = memref.load %arg1[%153] : memref<16xf32, #tpu.memory_space<smem>>
    %c8_i32_57 = arith.constant 8 : i32
    %155 = arith.muli %c8_i32_57, %138 : i32
    %c5_i32_58 = arith.constant 5 : i32
    %156 = arith.addi %155, %c5_i32_58 : i32
    %157 = arith.index_cast %156 : i32 to index
    %158 = memref.load %arg1[%157] : memref<16xf32, #tpu.memory_space<smem>>
    %c8_i32_59 = arith.constant 8 : i32
    %159 = arith.muli %c8_i32_59, %138 : i32
    %c6_i32_60 = arith.constant 6 : i32
    %160 = arith.addi %159, %c6_i32_60 : i32
    %161 = arith.index_cast %160 : i32 to index
    %162 = memref.load %arg1[%161] : memref<16xf32, #tpu.memory_space<smem>>
    %cst_61 = arith.constant 2.000000e+00 : f32
    %163 = arith.mulf %cst_61, %142 : f32
    %cst_62 = arith.constant 2.000000e+00 : f32
    %164 = arith.mulf %cst_62, %142 : f32
    %165 = arith.mulf %163, %164 : f32
    %166 = arith.mulf %146, %146 : f32
    %cst_63 = arith.constant 5.000000e-01 : f32
    %167 = arith.divf %cst_63, %158 : f32
    %168 = arith.mulf %162, %162 : f32
    %cst_64 = arith.constant 1.000000e+00 : f32
    %169 = arith.divf %cst_64, %168 : f32
    %170 = arith.mulf %169, %169 : f32
    %c1_65 = arith.constant 1 : index
    %c0_66 = arith.constant 0 : index
    %c0_67 = arith.constant 0 : index
    %171 = vector.load %arg4[%c1_65, %c0_66, %c0_67] : memref<2x16x64xf32, #tpu.memory_space<vmem>>, vector<1x14x64xf32>
    %172 = vector.shape_cast %171 : vector<1x14x64xf32> to vector<14x64xf32>
    %c1_68 = arith.constant 1 : index
    %c1_69 = arith.constant 1 : index
    %c0_70 = arith.constant 0 : index
    %173 = vector.load %arg4[%c1_68, %c1_69, %c0_70] : memref<2x16x64xf32, #tpu.memory_space<vmem>>, vector<1x14x64xf32>
    %174 = vector.shape_cast %173 : vector<1x14x64xf32> to vector<14x64xf32>
    %c1_71 = arith.constant 1 : index
    %c2_72 = arith.constant 2 : index
    %c0_73 = arith.constant 0 : index
    %175 = vector.load %arg4[%c1_71, %c2_72, %c0_73] : memref<2x16x64xf32, #tpu.memory_space<vmem>>, vector<1x14x64xf32>
    %176 = vector.shape_cast %175 : vector<1x14x64xf32> to vector<14x64xf32>
    %177 = arith.subf %176, %172 : vector<14x64xf32>
    %178 = vector.broadcast %167 : f32 to vector<14x64xf32>
    %179 = arith.mulf %177, %178 : vector<14x64xf32>
    %180 = vector.extract_strided_slice %174 {offsets = [0, 62], sizes = [14, 2], strides = [1, 1]} : vector<14x64xf32> to vector<14x2xf32>
    %181 = vector.extract_strided_slice %174 {offsets = [0, 0], sizes = [14, 62], strides = [1, 1]} : vector<14x64xf32> to vector<14x62xf32>
    %182 = tpu.concatenate %180, %181 in 1 : vector<14x2xf32>, vector<14x62xf32> -> vector<14x64xf32>
    %183 = vector.extract_strided_slice %174 {offsets = [0, 2], sizes = [14, 62], strides = [1, 1]} : vector<14x64xf32> to vector<14x62xf32>
    %184 = vector.extract_strided_slice %174 {offsets = [0, 0], sizes = [14, 2], strides = [1, 1]} : vector<14x64xf32> to vector<14x2xf32>
    %185 = tpu.concatenate %183, %184 in 1 : vector<14x62xf32>, vector<14x2xf32> -> vector<14x64xf32>
    %186 = vector.extract_strided_slice %174 {offsets = [0, 60], sizes = [14, 4], strides = [1, 1]} : vector<14x64xf32> to vector<14x4xf32>
    %187 = vector.extract_strided_slice %174 {offsets = [0, 0], sizes = [14, 60], strides = [1, 1]} : vector<14x64xf32> to vector<14x60xf32>
    %188 = tpu.concatenate %186, %187 in 1 : vector<14x4xf32>, vector<14x60xf32> -> vector<14x64xf32>
    %189 = vector.extract_strided_slice %174 {offsets = [0, 4], sizes = [14, 60], strides = [1, 1]} : vector<14x64xf32> to vector<14x60xf32>
    %190 = vector.extract_strided_slice %174 {offsets = [0, 0], sizes = [14, 4], strides = [1, 1]} : vector<14x64xf32> to vector<14x4xf32>
    %191 = tpu.concatenate %189, %190 in 1 : vector<14x60xf32>, vector<14x4xf32> -> vector<14x64xf32>
    %cst_74 = arith.constant 2.000000e+00 : f32
    %192 = vector.broadcast %cst_74 : f32 to vector<14x64xf32>
    %193 = arith.mulf %192, %174 : vector<14x64xf32>
    %194 = arith.subf %185, %193 : vector<14x64xf32>
    %195 = arith.addf %194, %182 : vector<14x64xf32>
    %196 = vector.broadcast %169 : f32 to vector<14x64xf32>
    %197 = arith.mulf %195, %196 : vector<14x64xf32>
    %cst_75 = arith.constant 4.000000e+00 : f32
    %198 = vector.broadcast %cst_75 : f32 to vector<14x64xf32>
    %199 = arith.mulf %198, %185 : vector<14x64xf32>
    %200 = arith.subf %191, %199 : vector<14x64xf32>
    %cst_76 = arith.constant 6.000000e+00 : f32
    %201 = vector.broadcast %cst_76 : f32 to vector<14x64xf32>
    %202 = arith.mulf %201, %174 : vector<14x64xf32>
    %203 = arith.addf %200, %202 : vector<14x64xf32>
    %cst_77 = arith.constant 4.000000e+00 : f32
    %204 = vector.broadcast %cst_77 : f32 to vector<14x64xf32>
    %205 = arith.mulf %204, %182 : vector<14x64xf32>
    %206 = arith.subf %203, %205 : vector<14x64xf32>
    %207 = arith.addf %206, %188 : vector<14x64xf32>
    %208 = vector.broadcast %170 : f32 to vector<14x64xf32>
    %209 = arith.mulf %207, %208 : vector<14x64xf32>
    %210 = vector.extract_strided_slice %174 {offsets = [0, 1], sizes = [14, 63], strides = [1, 1]} : vector<14x64xf32> to vector<14x63xf32>
    %211 = vector.extract_strided_slice %174 {offsets = [0, 0], sizes = [14, 1], strides = [1, 1]} : vector<14x64xf32> to vector<14x1xf32>
    %212 = tpu.concatenate %210, %211 in 1 : vector<14x63xf32>, vector<14x1xf32> -> vector<14x64xf32>
    %213 = vector.extract_strided_slice %197 {offsets = [0, 63], sizes = [14, 1], strides = [1, 1]} : vector<14x64xf32> to vector<14x1xf32>
    %214 = vector.extract_strided_slice %197 {offsets = [0, 0], sizes = [14, 63], strides = [1, 1]} : vector<14x64xf32> to vector<14x63xf32>
    %215 = tpu.concatenate %213, %214 in 1 : vector<14x1xf32>, vector<14x63xf32> -> vector<14x64xf32>
    %216 = vector.extract_strided_slice %209 {offsets = [0, 63], sizes = [14, 1], strides = [1, 1]} : vector<14x64xf32> to vector<14x1xf32>
    %217 = vector.extract_strided_slice %209 {offsets = [0, 0], sizes = [14, 63], strides = [1, 1]} : vector<14x64xf32> to vector<14x63xf32>
    %218 = tpu.concatenate %216, %217 in 1 : vector<14x1xf32>, vector<14x63xf32> -> vector<14x64xf32>
    %219 = arith.subf %179, %212 : vector<14x64xf32>
    %220 = vector.broadcast %165 : f32 to vector<14x64xf32>
    %221 = arith.mulf %220, %215 : vector<14x64xf32>
    %222 = arith.subf %179, %221 : vector<14x64xf32>
    %223 = vector.broadcast %166 : f32 to vector<14x64xf32>
    %224 = arith.mulf %223, %218 : vector<14x64xf32>
    %225 = arith.addf %222, %224 : vector<14x64xf32>
    %cst_78 = arith.constant 2.000000e+00 : f32
    %226 = arith.mulf %cst_78, %150 : f32
    %227 = vector.broadcast %226 : f32 to vector<14x64xf32>
    %228 = arith.mulf %227, %174 : vector<14x64xf32>
    %229 = arith.addf %225, %228 : vector<14x64xf32>
    %cst_79 = arith.constant 2.000000e+00 : f32
    %230 = arith.mulf %cst_79, %154 : f32
    %231 = vector.broadcast %230 : f32 to vector<14x64xf32>
    %232 = arith.mulf %231, %197 : vector<14x64xf32>
    %233 = arith.subf %229, %232 : vector<14x64xf32>
    %234 = vector.broadcast %0 : vector<1x64xf32> to vector<14x64xf32>
    %235 = arith.mulf %234, %219 : vector<14x64xf32>
    %236 = vector.broadcast %1 : vector<1x64xf32> to vector<14x64xf32>
    %237 = arith.mulf %236, %233 : vector<14x64xf32>
    %238 = arith.addf %235, %237 : vector<14x64xf32>
    %239 = arith.mulf %238, %238 : vector<14x64xf32>
    %cst_80 = arith.constant dense<0.000000e+00> : vector<64xf32>
    %240 = vector.multi_reduction <add>, %239, %cst_80 [0] : vector<14x64xf32> to vector<64xf32>
    %241 = vector.shape_cast %240 : vector<64xf32> to vector<1x64xf32>
    %c1_81 = arith.constant 1 : index
    %c0_82 = arith.constant 0 : index
    %c0_83 = arith.constant 0 : index
    %242 = vector.load %arg7[%c1_81, %c0_82, %c0_83] : memref<2x1x64xf32, #tpu.memory_space<vmem>>, vector<1x1x64xf32>
    %243 = vector.shape_cast %242 : vector<1x1x64xf32> to vector<1x64xf32>
    %244 = vector.shape_cast %241 : vector<1x64xf32> to vector<1x1x64xf32>
    tpu.vector_store %arg7[%c1_81, %c0_82, %c0_83], %244 {strides = array<i32>} : memref<2x1x64xf32, #tpu.memory_space<vmem>>, vector<1x1x64xf32>,
    %c1_84 = arith.constant 1 : index
    %c0_85 = arith.constant 0 : index
    %c0_86 = arith.constant 0 : index
    %245 = vector.load %arg4[%c1_84, %c0_85, %c0_86] : memref<2x16x64xf32, #tpu.memory_space<vmem>>, vector<1x1x64xf32>
    %246 = vector.shape_cast %245 : vector<1x1x64xf32> to vector<1x64xf32>
    %c1_87 = arith.constant 1 : index
    %c0_88 = arith.constant 0 : index
    %c0_89 = arith.constant 0 : index
    %247 = vector.load %arg3[%c1_87, %c0_88, %c0_89] : memref<2x1x64xf32, #tpu.memory_space<vmem>>, vector<1x1x64xf32>
    %248 = vector.shape_cast %247 : vector<1x1x64xf32> to vector<1x64xf32>
    %249 = arith.subf %246, %248 : vector<1x64xf32>
    %250 = arith.mulf %2, %249 : vector<1x64xf32>
    %251 = arith.mulf %250, %250 : vector<1x64xf32>
    %c1_90 = arith.constant 1 : index
    %c0_91 = arith.constant 0 : index
    %c0_92 = arith.constant 0 : index
    %252 = vector.load %arg5[%c1_90, %c0_91, %c0_92] : memref<2x1x64xf32, #tpu.memory_space<vmem>>, vector<1x1x64xf32>
    %253 = vector.shape_cast %252 : vector<1x1x64xf32> to vector<1x64xf32>
    %254 = vector.shape_cast %251 : vector<1x64xf32> to vector<1x1x64xf32>
    tpu.vector_store %arg5[%c1_90, %c0_91, %c0_92], %254 {strides = array<i32>} : memref<2x1x64xf32, #tpu.memory_space<vmem>>, vector<1x1x64xf32>,
    %c1_93 = arith.constant 1 : index
    %c15_94 = arith.constant 15 : index
    %c0_95 = arith.constant 0 : index
    %255 = vector.load %arg4[%c1_93, %c15_94, %c0_95] : memref<2x16x64xf32, #tpu.memory_space<vmem>>, vector<1x1x64xf32>
    %256 = vector.shape_cast %255 : vector<1x1x64xf32> to vector<1x64xf32>
    %257 = vector.broadcast %3 : vector<1x64xf32> to vector<14x64xf32>
    %258 = arith.mulf %257, %174 : vector<14x64xf32>
    %259 = arith.mulf %258, %174 : vector<14x64xf32>
    %cst_96 = arith.constant dense<0.000000e+00> : vector<64xf32>
    %260 = vector.multi_reduction <add>, %259, %cst_96 [0] : vector<14x64xf32> to vector<64xf32>
    %261 = vector.shape_cast %260 : vector<64xf32> to vector<1x64xf32>
    %262 = arith.mulf %246, %246 : vector<1x64xf32>
    %263 = arith.mulf %256, %256 : vector<1x64xf32>
    %264 = arith.addf %262, %263 : vector<1x64xf32>
    %265 = arith.mulf %3, %264 : vector<1x64xf32>
    %266 = arith.addf %261, %265 : vector<1x64xf32>
    %c1_97 = arith.constant 1 : index
    %c0_98 = arith.constant 0 : index
    %c0_99 = arith.constant 0 : index
    %267 = vector.load %arg6[%c1_97, %c0_98, %c0_99] : memref<2x1x64xf32, #tpu.memory_space<vmem>>, vector<1x1x64xf32>
    %268 = vector.shape_cast %267 : vector<1x1x64xf32> to vector<1x64xf32>
    %269 = vector.shape_cast %266 : vector<1x64xf32> to vector<1x1x64xf32>
    tpu.vector_store %arg6[%c1_97, %c0_98, %c0_99], %269 {strides = array<i32>} : memref<2x1x64xf32, #tpu.memory_space<vmem>>, vector<1x1x64xf32>,
    return
  }
  func.func @transform_0(%arg0: i32) -> i32 {
    %c0_i32 = arith.constant 0 : i32
    %c0_i32_0 = arith.constant 0 : i32
    return %c0_i32 : i32
  }
  func.func @transform_1(%arg0: i32) -> (i32, i32) {
    %c0_i32 = arith.constant 0 : i32
    %c0_i32_0 = arith.constant 0 : i32
    %c0_i32_1 = arith.constant 0 : i32
    return %c0_i32, %c0_i32_0 : i32, i32
  }
  func.func @transform_2(%arg0: i32) -> (i32, i32, i32) {
    %c0_i32 = arith.constant 0 : i32
    %c0_i32_0 = arith.constant 0 : i32
    %c0_i32_1 = arith.constant 0 : i32
    return %arg0, %c0_i32, %c0_i32_0 : i32, i32, i32
  }
  func.func @transform_3(%arg0: i32) -> (i32, i32, i32) {
    %c0_i32 = arith.constant 0 : i32
    %c0_i32_0 = arith.constant 0 : i32
    %c0_i32_1 = arith.constant 0 : i32
    return %arg0, %c0_i32, %c0_i32_0 : i32, i32, i32
  }
  func.func @transform_4(%arg0: i32) -> (i32, i32, i32) {
    %c0_i32 = arith.constant 0 : i32
    %c0_i32_0 = arith.constant 0 : i32
    %c0_i32_1 = arith.constant 0 : i32
    return %arg0, %c0_i32, %c0_i32_0 : i32, i32, i32
  }
  func.func @transform_5(%arg0: i32) -> (i32, i32, i32) {
    %c0_i32 = arith.constant 0 : i32
    %c0_i32_0 = arith.constant 0 : i32
    %c0_i32_1 = arith.constant 0 : i32
    return %arg0, %c0_i32, %c0_i32_0 : i32, i32, i32
  }
  func.func @transform_6(%arg0: i32) -> (i32, i32, i32) {
    %c0_i32 = arith.constant 0 : i32
    %c0_i32_0 = arith.constant 0 : i32
    %c0_i32_1 = arith.constant 0 : i32
    return %arg0, %c0_i32, %c0_i32_0 : i32, i32, i32
  }
}

</mosaic_0001>

<bundles_post_ra>
// kernel: tpu_custom_call.1
= control target key start
LH: loop header
LB: loop body
LE: loop exit
PB: predicated region body
PF: predicated region fallthrough
CT: control target
= control target key end

     0   :  { %12 = vsyncpa [#allocation5], 0  ;;  %s1143_s0 = inlined_call_operand.hbm [shape: f32[16], index: 0, kind: input, shape index: {}]   ;;  %s1144_s1 = inlined_call_operand.hbm [shape: f32[4,64], index: 1, kind: input, shape index: {}]   ;;  %s1145_s2 = inlined_call_operand.vmem [shape: f32[2,1,64], index: 2, kind: input, shape index: {}]   ;;  %s1146_s3 = inlined_call_operand.hbm [shape: f32[2,16,64], index: 3, kind: input, shape index: {}]   ;;  %s1147_s4 = inlined_call_operand.hbm [shape: f32[2,1,64], index: 4, kind: output, shape index: {0}]   ;;  %s1148_s5 = inlined_call_operand.hbm [shape: f32[2,1,64], index: 5, kind: output, shape index: {1}]   ;;  %s1149_s6 = inlined_call_operand.hbm [shape: f32[2,1,64], index: 6, kind: output, shape index: {2}]  }
   0x1   :  { %13 = vsyncpa [#allocation3], 0 }
   0x2   :  { %14 = vsyncpa [#allocation8], 0 }
   0x3   :  { %15 = vsyncpa [#allocation4], 0 }
   0x4   :  { %16 = vsyncpa [#allocation11], 0  ;;  %s658_s23 = scalar_lea.hbm %s1143_s0, 16 }
   0x5   :  { %p659_p0 = scmp.ne.s32.totalorder %s1143_s0, %s658_s23  ;;  %p662_p1 = scmp.lt.u32.totalorder %s658_s23, %s1143_s0 }
   0x7   :  { %p664_p2 = pnand %p662_p1, %p659_p0 }
   0x9   :  { %667 = shalt.err (!%p664_p2)
}
   0xa   :  { %s788_s28 = smov [#allocation2]   ;;  %s789_s7 = smov [#allocation6]  }
   0xb   :  { %24 = dma.hbm_to_smem %s1143_s0, 16, %s788_s28, [#allocation5]  }
   0xc   :  { %s31_s8 = sshll.u32 %s789_s7, 4  ;;  %s790_s9 = smov [#allocation7]   ;;  %s32_s8 = int_to_ptr.vmem [resolvable:$true] %s31_s8 }
   0xd   :  { %s42_s10 = sshll.u32 %s790_s9, 4  ;;  %s668_s13 = scalar_lea.hbm %s1144_s1, 64  ;;  %s43_s10 = int_to_ptr.vmem [resolvable:$true] %s42_s10 }
   0xe   :  { %p669_p3 = scmp.ne.s32.totalorder %s1144_s1, %s668_s13  ;;  %p672_p4 = scmp.lt.u32.totalorder %s668_s13, %s1144_s1 }
  0x10   :  { %p674_p5 = pnand %p672_p4, %p669_p3 }
  0x12   :  { %677 = shalt.err (!%p674_p5)
}
  0x13   :  { %s678_s0 = scalar_lea.vmem %s32_s8, 64  ;;  %p683_p7 = scmp.lt.s32.totalorder %s32_s8, %s32_s8 }
  0x14   :  { %p679_p6 = scmp.ne.s32.totalorder %s32_s8, %s678_s0  ;;  %p684_p8 = scmp.lt.s32.totalorder %s678_s0, %s678_s0 }
  0x16   :  { %p685_p9 = por %p684_p8, %p683_p7 }
  0x18   :  { %p686_p10 = pnand %p685_p9, %p679_p6 }
  0x1a   :  { %689 = shalt.err (!%p686_p10)
}
  0x1b   :  { %34 = dma.hbm_to_vmem [thread:$0]  %s1144_s1, 64, %s32_s8, [#allocation3]  }
  0x1c   :  { %s690_s22 = scalar_lea.hbm %s1146_s3, 512 }
  0x1d   :  { %p691_p11 = scmp.ne.s32.totalorder %s1146_s3, %s690_s22  ;;  %p694_p12 = scmp.lt.u32.totalorder %s690_s22, %s1146_s3 }
  0x1f   :  { %p696_p13 = pnand %p694_p12, %p691_p11 }
  0x21   :  { %699 = shalt.err (!%p696_p13)
}
  0x22   :  { %s700_s27 = scalar_lea.vmem %s43_s10, 512  ;;  %p705_p1 = scmp.lt.s32.totalorder %s43_s10, %s43_s10 }
  0x23   :  { %p701_p0 = scmp.ne.s32.totalorder %s43_s10, %s700_s27  ;;  %p706_p2 = scmp.lt.s32.totalorder %s700_s27, %s700_s27 }
  0x25   :  { %p707_p3 = por %p706_p2, %p705_p1 }
  0x27   :  { %p708_p4 = pnand %p707_p3, %p701_p0 }
  0x29   :  { %711 = shalt.err (!%p708_p4)
}
  0x2a   :  { %s791_s1 = smov 128   ;;  %s792_s28 = smov 8  }
  0x2b   :  { %48 = dma.hbm_to_vmem [thread:$0]  %s1146_s3, 512, %s43_s10, [#allocation8], %s791_s1, %s791_s1, %s792_s28  }
  0x2c   :  { %778 = dma.done.wait [#allocation5], 16  }
  0x2d   :  { %779 = vsyncadd [#allocation5], 4294967280 }
  0x2e   :  { %780 = dma.done.wait [#allocation3], 64  }
  0x2f   :  { %781 = vsyncadd [#allocation3], 4294967232 }
  0x30   :  { %782 = dma.done.wait [#allocation8], 512  }
  0x31   :  { %783 = vsyncadd [#allocation8], 4294966784 }
  0x32   :  { %58 = sfence }
  0x33   :  { %v880_v0 = vld [vmem:[#allocation7 + $0x1] sm:$0xff]  ;;  %s793_s7 = smov 62   ;;  %s794_s8 = smov 126   ;;  %v884_v1 = vld [vmem:[#allocation7 + $0x9] sm:$0x3f]  ;;  %v888_v2 = vld [vmem:[#allocation7 + $0x11] sm:$0xff] }
  0x34   :  { %121 = vrot.lane.b32.xlu1 %v880_v0, %s793_s7  ;;  %115 = vrot.lane.b32.xlu0 %v880_v0, %s794_s8  ;;  %s610_s3 = sld [smem:[#allocation2 + $0x5]]  ;;  %s611_s9 = sld [smem:[#allocation2 + $0x6]]  ;;  %v890_v3 = vld [vmem:[#allocation7 + $0x19] sm:$0x3f]  ;;  %vm127_vm0 = vcmask 506880   ;;  %v160_v28 = vmul.f32 2.0, %v880_v0 }
  0x35   :  { %s618_s10 = sld [smem:[#allocation2 + $0xd]]  ;;  %s619_s11 = sld [smem:[#allocation2 + $0xe]]  ;;  %v161_v29 = vmul.f32 2.0, %v884_v1  ;;  %vm112_vm1 = vcmask 15360   ;;  %vm157_vm2 = vcmask 490496   ;;  %v414_v43 = vmul.f32 2.0, %v890_v3 }
  0x36   :  { %s795_s14 = smov 124   ;;  %s796_s15 = smov 60   ;;  %v413_v44 = vmul.f32 2.0, %v888_v2  ;;  %v174_v57 = vmul.f32 6.0, %v884_v1  ;;  %vm142_vm3 = vcmask 31744   ;;  %vm276_vm4 = vcmask 521216  }
  0x37   :  { %s797_s16 = smov 66   ;;  %s798_s17 = smov 2   ;;  %vm274_vm5 = vcmask 523264   ;;  %vm285_vm6 = vcmask 516096  }
  0x38   :  { %123 = vrot.lane.b32.xlu1 %v884_v1, %s793_s7  ;;  %117 = vrot.lane.b32.xlu0 %v884_v1, %s794_s8  ;;  %s799_s0 = smov 68   ;;  %s800_s18 = smov 4  }
  0x39   :  { %s801_s19 = smov 127   ;;  %s802_s20 = smov 63  }
  0x3a   :  { %v78_v4 = vstv %s610_s3  ;;  %s82_s12 = smul.f32 %s611_s9, %s611_s9  ;;  %s803_s24 = smov 65  }
  0x3b   :  { %650 = vrcp.f32 %v78_v4  ;;  %v334_v5 = vstv %s618_s10  ;;  %s338_s13 = smul.f32 %s619_s11, %s619_s11  ;;  %s804_s26 = smov 1  }
  0x3c   :  { %373 = vrot.lane.b32.xlu1 %v890_v3, %s794_s8  ;;  %371 = vrot.lane.b32.xlu0 %v888_v2, %s794_s8  ;;  %v83_v6 = vstv %s82_s12  ;;  %652 = vrcp.f32 %v334_v5  ;;  %v173_v5 = vmul.f32 6.0, %v880_v0  ;;  %s805_s8 = smov [#allocation9]   ;;  %s806_s9 = smov [#allocation10]  }
  0x3d   :  { %654 = vrcp.f32 %v83_v6  ;;  %v339_v7 = vstv %s338_s13  ;;  %s562_s3 = sshll.u32 %s805_s8, 4  ;;  %s574_s10 = sshll.u32 %s806_s9, 4  ;;  %s563_s3 = int_to_ptr.vmem [resolvable:$true] %s562_s3  ;;  %s1037_s10 = int_to_ptr.vmem [resolvable:$true] %s574_s10 }
  0x3e   :  { %656 = vrcp.f32 %v339_v7  ;;  %p717_p6 = scmp.lt.s32.totalorder %s563_s3, %s563_s3 }
  0x40   :  { %379 = vrot.lane.b32.xlu1 %v890_v3, %s793_s7  ;;  %377 = vrot.lane.b32.xlu0 %v888_v2, %s793_s7 }
  0x44   :  { %147 = vrot.lane.b32.xlu1 %v884_v1, %s795_s14  ;;  %145 = vrot.lane.b32.xlu0 %v880_v0, %s795_s14 }
  0x45   :  { %v651_v8 = vpop.eup %650 }
  0x46   :  { %v653_v9 = vpop.eup %652  ;;  %621 = vpush %v651_v8 }
  0x47   :  { %v655_v10 = vpop.eup %654 }
  0x48   :  { %153 = vrot.lane.b32.xlu1 %v884_v1, %s796_s15  ;;  %151 = vrot.lane.b32.xlu0 %v880_v0, %s796_s15  ;;  %v657_v11 = vpop.eup %656  ;;  %623 = vpush %v655_v10 }
  0x49   :  { %625 = vpush %v653_v9 }
  0x4a   :  { %627 = vpush %v657_v11 }
  0x4c   :  { %401 = vrot.lane.b32.xlu1 %v890_v3, %s795_s14  ;;  %399 = vrot.lane.b32.xlu0 %v888_v2, %s795_s14 }
  0x50   :  { %407 = vrot.lane.b32.xlu1 %v890_v3, %s796_s15  ;;  %405 = vrot.lane.b32.xlu0 %v888_v2, %s796_s15 }
  0x54   :  { %102 = vrot.lane.b32.xlu1 %v884_v1, %s797_s16  ;;  %100 = vrot.lane.b32.xlu0 %v880_v0, %s797_s16 }
  0x58   :  { %108 = vrot.lane.b32.xlu1 %v884_v1, %s798_s17  ;;  %106 = vrot.lane.b32.xlu0 %v880_v0, %s798_s17 }
  0x5c   :  { %359 = vrot.lane.b32.xlu1 %v890_v3, %s797_s16  ;;  %357 = vrot.lane.b32.xlu0 %v888_v2, %s797_s16 }
  0x60   :  { %365 = vrot.lane.b32.xlu1 %v890_v3, %s798_s17  ;;  %363 = vrot.lane.b32.xlu0 %v888_v2, %s798_s17 }
  0x64   :  { %132 = vrot.lane.b32.xlu1 %v884_v1, %s799_s0  ;;  %130 = vrot.lane.b32.xlu0 %v880_v0, %s799_s0 }
  0x68   :  { %138 = vrot.lane.b32.xlu1 %v884_v1, %s800_s18  ;;  %136 = vrot.lane.b32.xlu0 %v880_v0, %s800_s18 }
  0x6c   :  { %387 = vrot.lane.b32.xlu1 %v890_v3, %s799_s0  ;;  %385 = vrot.lane.b32.xlu0 %v888_v2, %s799_s0 }
  0x70   :  { %393 = vrot.lane.b32.xlu1 %v890_v3, %s800_s18  ;;  %391 = vrot.lane.b32.xlu0 %v888_v2, %s800_s18 }
  0x74   :  { %188 = vrot.lane.b32.xlu1 %v884_v1, %s801_s19  ;;  %186 = vrot.lane.b32.xlu0 %v880_v0, %s801_s19 }
  0x77   :  { %s938_s21 = spop %621 }
  0x78   :  { %194 = vrot.lane.b32.xlu1 %v884_v1, %s802_s20  ;;  %192 = vrot.lane.b32.xlu0 %v880_v0, %s802_s20 }
  0x79   :  { %s942_s22 = spop %623 }
  0x7a   :  { %v166_v40 = vstv %s942_s22  ;;  %s953_s23 = spop %625  ;;  %s86_s27 = smul.f32 %s942_s22, %s942_s22 }
  0x7b   :  { %s962_s25 = spop %627 }
  0x7c   :  { %v419_v63 = vstv %s962_s25  ;;  %s342_s1 = smul.f32 %s962_s25, %s962_s25 }
  0xa6   :  { %v122_v12 = vpop.permute.xlu1 %121  ;;  %v116_v13 = vpop.permute.xlu0 %115 }
  0xa7   :  { %v128_v32 = vsel %vm127_vm0, %v116_v13, %v122_v12 }
  0xa8   :  { %v162_v34 = vsub.f32 %v128_v32, %v160_v28  ;;  %v169_v54 = vmul.f32 4.0, %v128_v32 }
  0xaa   :  { %v124_v14 = vpop.permute.xlu1 %123  ;;  %v118_v15 = vpop.permute.xlu0 %117 }
  0xab   :  { %v129_v33 = vsel %vm127_vm0, %v118_v15, %v124_v14 }
  0xac   :  { %v163_v35 = vsub.f32 %v129_v33, %v161_v29  ;;  %v170_v52 = vmul.f32 4.0, %v129_v33 }
  0xae   :  { %v374_v16 = vpop.permute.xlu1 %373  ;;  %v372_v17 = vpop.permute.xlu0 %371 }
  0xb2   :  { %v380_v18 = vpop.permute.xlu1 %379  ;;  %v378_v19 = vpop.permute.xlu0 %377 }
  0xb3   :  { %v384_v49 = vsel %vm127_vm0, %v374_v16, %v380_v18  ;;  %v383_v50 = vsel %vm127_vm0, %v372_v17, %v378_v19 }
  0xb4   :  { %v416_v55 = vsub.f32 %v384_v49, %v414_v43  ;;  %v415_v56 = vsub.f32 %v383_v50, %v413_v44  ;;  %v423_v17 = vmul.f32 4.0, %v384_v49  ;;  %v422_v19 = vmul.f32 4.0, %v383_v50 }
  0xb6   :  { %v148_v20 = vpop.permute.xlu1 %147  ;;  %v146_v21 = vpop.permute.xlu0 %145 }
  0xba   :  { %v154_v22 = vpop.permute.xlu1 %153  ;;  %v152_v23 = vpop.permute.xlu0 %151 }
  0xbb   :  { %v159_v51 = vsel %vm157_vm2, %v148_v20, %v154_v22  ;;  %v158_v53 = vsel %vm157_vm2, %v146_v21, %v152_v23 }
  0xbc   :  { %v172_v60 = vsub.f32 %v159_v51, %v170_v52  ;;  %v171_v4 = vsub.f32 %v158_v53, %v169_v54  ;;  %v436_v53 = vstv %s342_s1 }
  0xbe   :  { %v928_v24 = vpop.permute.xlu1 %401  ;;  %v930_v25 = vpop.permute.xlu0 %399  ;;  %v176_v14 = vadd.f32 %v174_v57, %v172_v60  ;;  %v175_v15 = vadd.f32 %v173_v5, %v171_v4  ;;  %v62_v57 = vld [vmem:[#allocation6 + $0x3] sm:$0x1] }
  0xc2   :  { %v932_v26 = vpop.permute.xlu1 %407  ;;  %v934_v27 = vpop.permute.xlu0 %405 }
  0xc3   :  { %v412_v16 = vsel %vm157_vm2, %v928_v24, %v932_v26  ;;  %v411_v18 = vsel %vm157_vm2, %v930_v25, %v934_v27  ;;  %v427_v24 = vmul.f32 6.0, %v890_v3  ;;  %v183_v27 = vstv %s86_s27 }
  0xc4   :  { %v425_v26 = vsub.f32 %v412_v16, %v423_v17 }
  0xc6   :  { %v103_v30 = vpop.permute.xlu1 %102  ;;  %v101_v31 = vpop.permute.xlu0 %100 }
  0xca   :  { %v109_v36 = vpop.permute.xlu1 %108  ;;  %v107_v37 = vpop.permute.xlu0 %106 }
  0xcb   :  { %v114_v38 = vsel %vm112_vm1, %v103_v30, %v109_v36  ;;  %v113_v39 = vsel %vm112_vm1, %v101_v31, %v107_v37  ;;  %v426_v30 = vmul.f32 6.0, %v888_v2  ;;  %v424_v31 = vsub.f32 %v411_v18, %v422_v19 }
  0xcc   :  { %v165_v41 = vadd.f32 %v163_v35, %v114_v38  ;;  %v164_v42 = vadd.f32 %v162_v34, %v113_v39  ;;  %v178_v8 = vmul.f32 4.0, %v114_v38  ;;  %v177_v9 = vmul.f32 4.0, %v113_v39 }
  0xcd   :  { %v429_v39 = vadd.f32 %v427_v24, %v425_v26 }
  0xce   :  { %v949_v45 = vmul.f32 %v166_v40, %v164_v42  ;;  %v951_v46 = vmul.f32 %v166_v40, %v165_v41  ;;  %v360_v47 = vpop.permute.xlu1 %359  ;;  %v358_v48 = vpop.permute.xlu0 %357  ;;  %v180_v21 = vsub.f32 %v176_v14, %v178_v8  ;;  %v179_v23 = vsub.f32 %v175_v15, %v177_v9 }
  0xcf   :  { %v428_v40 = vadd.f32 %v426_v30, %v424_v31  ;;  %v294_v41 = vlaneseq }
  0xd0   :  { %205 = vrot.lane.b32.xlu1 %v951_v46, %s803_s24  ;;  %203 = vrot.lane.b32.xlu0 %v949_v45, %s803_s24 }
  0xd1   :  { %v295_v50 = vshrl.u32 %v294_v41, 7 }
  0xd2   :  { %v366_v58 = vpop.permute.xlu1 %365  ;;  %v364_v59 = vpop.permute.xlu0 %363 }
  0xd3   :  { %v370_v61 = vsel %vm112_vm1, %v360_v47, %v366_v58  ;;  %v369_v62 = vsel %vm112_vm1, %v358_v48, %v364_v59  ;;  %v296_v54 = vsub.s32 0, %v295_v50 }
  0xd4   :  { %v418_v6 = vadd.f32 %v416_v55, %v370_v61  ;;  %v417_v7 = vadd.f32 %v415_v56, %v369_v62  ;;  %211 = vrot.lane.b32.xlu1 %v951_v46, %s804_s26  ;;  %209 = vrot.lane.b32.xlu0 %v949_v45, %s804_s26  ;;  %v431_v33 = vmul.f32 4.0, %v370_v61  ;;  %v430_v34 = vmul.f32 4.0, %v369_v62 }
  0xd5   :  { %v297_v58 = vrot.slane %v62_v57, %v296_v54 }
  0xd6   :  { %v974_v10 = vmul.f32 %v419_v63, %v417_v7  ;;  %v976_v11 = vmul.f32 %v419_v63, %v418_v6  ;;  %v133_v12 = vpop.permute.xlu1 %132  ;;  %v131_v13 = vpop.permute.xlu0 %130  ;;  %v433_v42 = vsub.f32 %v429_v39, %v431_v33  ;;  %v432_v44 = vsub.f32 %v428_v40, %v430_v34 }
  0xd7   :  { %v298_v59 = vmul.f32 %v297_v58, %v880_v0  ;;  %v299_v60 = vmul.f32 %v297_v58, %v884_v1  ;;  %v537_v61 = vmul.f32 %v888_v2, %v297_v58  ;;  %v538_v62 = vmul.f32 %v890_v3, %v297_v58 }
  0xd8   :  { %457 = vrot.lane.b32.xlu1 %v976_v11, %s803_s24  ;;  %455 = vrot.lane.b32.xlu0 %v974_v10, %s803_s24 }
  0xd9   :  { %v300_v63 = vmul.f32 %v298_v59, %v880_v0  ;;  %v301_v4 = vmul.f32 %v299_v60, %v884_v1  ;;  %v539_v5 = vmul.f32 %v537_v61, %v888_v2  ;;  %v540_v8 = vmul.f32 %v538_v62, %v890_v3 }
  0xda   :  { %v139_v20 = vpop.permute.xlu1 %138  ;;  %v137_v22 = vpop.permute.xlu0 %136 }
  0xdb   :  { %v144_v28 = vsel %vm142_vm3, %v133_v12, %v139_v20  ;;  %v143_v29 = vsel %vm142_vm3, %v131_v13, %v137_v22  ;;  %v302_v6 = vsel %vm274_vm5, %v300_v63, 0.0  ;;  %v303_v7 = vsel %vm276_vm4, %v301_v4, 0.0  ;;  %v287_v20 = vld [vmem:[#allocation7] sm:$0x1]  ;;  %v528_v22 = vld [vmem:[#allocation7 + $0x10] sm:$0x1] }
  0xdc   :  { %v182_v32 = vadd.f32 %v180_v21, %v144_v28  ;;  %v181_v25 = vadd.f32 %v179_v23, %v143_v29  ;;  %463 = vrot.lane.b32.xlu1 %v976_v11, %s804_s26  ;;  %461 = vrot.lane.b32.xlu0 %v974_v10, %s804_s26  ;;  %v304_v9 = vadd.f32 %v303_v7, %v302_v6  ;;  %v541_v12 = vsel %vm274_vm5, %v539_v5, 0.0  ;;  %v293_v21 = vld [vmem:[#allocation7 + $0xf] sm:$0x1]  ;;  %v536_v28 = vld [vmem:[#allocation7 + $0x1f] sm:$0x1] }
  0xdd   :  { %v542_v13 = vsel %vm276_vm4, %v540_v8, 0.0  ;;  %v311_v24 = vmul.f32 %v287_v20, %v287_v20  ;;  %v312_v26 = vmul.f32 %v293_v21, %v293_v21  ;;  %v550_v30 = vmul.f32 %v528_v22, %v528_v22 }
  0xde   :  { %v388_v35 = vpop.permute.xlu1 %387  ;;  %v386_v36 = vpop.permute.xlu0 %385  ;;  %v185_v37 = vmul.f32 %v183_v27, %v182_v32  ;;  %v184_v38 = vmul.f32 %v183_v27, %v181_v25  ;;  %v305_v14 = vrot.slane %v304_v9, 4  ;;  %v543_v15 = vadd.f32 %v542_v13, %v541_v12  ;;  %v61_v32 = vld [vmem:[#allocation6 + $0x2] sm:$0x1]  ;;  %v288_v25 = vld [vmem:[%s1145_s2] sm:$0x1] }
  0xdf   :  { %v551_v31 = vmul.f32 %v536_v28, %v536_v28  ;;  %v313_v33 = vadd.f32 %v312_v26, %v311_v24 }
  0xe0   :  { %222 = vrot.lane.b32.xlu1 %v185_v37, %s803_s24  ;;  %220 = vrot.lane.b32.xlu0 %v184_v38, %s803_s24  ;;  %v306_v16 = vadd.f32 %v305_v14, %v304_v9  ;;  %v544_v17 = vrot.slane %v543_v15, 4 }
  0xe1   :  { %v314_v40 = vmul.f32 %v313_v33, %v62_v57 }
  0xe2   :  { %v394_v43 = vpop.permute.xlu1 %393  ;;  %v392_v47 = vpop.permute.xlu0 %391  ;;  %v307_v18 = vrot.slane %v306_v16, 2  ;;  %v545_v19 = vadd.f32 %v544_v17, %v543_v15 }
  0xe3   :  { %v398_v48 = vsel %vm142_vm3, %v388_v35, %v394_v43  ;;  %v397_v49 = vsel %vm142_vm3, %v386_v36, %v392_v47  ;;  %v289_v35 = vsub.f32 %v287_v20, %v288_v25  ;;  %v620_v36 = vld [vmem:[%s1145_s2 + $0x1] sm:$0x1]  ;;  %s712_s2 = scalar_lea.vmem %s563_s3, 32 }
  0xe4   :  { %v435_v51 = vadd.f32 %v433_v42, %v398_v48  ;;  %v434_v52 = vadd.f32 %v432_v44, %v397_v49  ;;  %228 = vrot.lane.b32.xlu1 %v185_v37, %s804_s26  ;;  %226 = vrot.lane.b32.xlu0 %v184_v38, %s804_s26  ;;  %v308_v23 = vadd.f32 %v307_v18, %v306_v16  ;;  %v546_v29 = vrot.slane %v545_v19, 2  ;;  %p713_p5 = scmp.ne.s32.totalorder %s563_s3, %s712_s2  ;;  %p718_p7 = scmp.lt.s32.totalorder %s712_s2, %s712_s2 }
  0xe5   :  { %v552_v37 = vadd.f32 %v551_v31, %v550_v30  ;;  %v531_v38 = vsub.f32 %v528_v22, %v620_v36  ;;  %v290_v42 = vmul.f32 %v289_v35, %v61_v32 }
  0xe6   :  { %v438_v55 = vmul.f32 %v436_v53, %v435_v51  ;;  %v437_v56 = vmul.f32 %v436_v53, %v434_v52  ;;  %v309_v27 = vrot.slane %v308_v23, 1  ;;  %v547_v34 = vadd.f32 %v546_v29, %v545_v19  ;;  %p719_p8 = por %p718_p7, %p717_p6 }
  0xe7   :  { %v553_v43 = vmul.f32 %v552_v37, %v62_v57  ;;  %v532_v44 = vmul.f32 %v531_v38, %v61_v32  ;;  %v291_v49 = vmul.f32 %v290_v42, %v290_v42 }
  0xe8   :  { %473 = vrot.lane.b32.xlu1 %v438_v55, %s803_s24  ;;  %471 = vrot.lane.b32.xlu0 %v437_v56, %s803_s24  ;;  %v310_v39 = vadd.f32 %v309_v27, %v308_v23  ;;  %v548_v41 = vrot.slane %v547_v34, 1  ;;  %p720_p9 = pnand %p719_p8, %p713_p5 }
  0xe9   :  { %v533_v50 = vmul.f32 %v532_v44, %v532_v44  ;;  %292 = vst.msk [vmem:[#allocation9] sm:$0x1] %vm285_vm6, %v291_v49 }
  0xea   :  { %v315_v47 = vadd.f32 %v314_v40, %v310_v39  ;;  %v549_v48 = vadd.f32 %v548_v41, %v547_v34 }
  0xeb   :  { %535 = vst.msk [vmem:[#allocation9 + $0x1] sm:$0x1] %vm285_vm6, %v533_v50 }
  0xec   :  { %479 = vrot.lane.b32.xlu1 %v438_v55, %s804_s26  ;;  %477 = vrot.lane.b32.xlu0 %v437_v56, %s804_s26  ;;  %316 = vst.msk [vmem:[#allocation10] sm:$0x1] %vm285_vm6, %v315_v47  ;;  %v554_v51 = vadd.f32 %v553_v43, %v549_v48 }
  0xee   :  { %556 = vst.msk [vmem:[#allocation10 + $0x1] sm:$0x1] %vm285_vm6, %v554_v51 }
  0xf0   :  { %441 = vrot.lane.b32.xlu1 %v890_v3, %s801_s19  ;;  %439 = vrot.lane.b32.xlu0 %v888_v2, %s801_s19 }
  0xf4   :  { %447 = vrot.lane.b32.xlu1 %v890_v3, %s802_s20  ;;  %445 = vrot.lane.b32.xlu0 %v888_v2, %s802_s20 }
  0xf5   :  { %723 = shalt.err (!%p720_p9)
}
  0xf6   :  { %s724_s13 = scalar_lea.hbm %s1147_s4, 32 }
  0xf7   :  { %p725_p10 = scmp.ne.s32.totalorder %s1147_s4, %s724_s13  ;;  %p728_p11 = scmp.lt.u32.totalorder %s724_s13, %s1147_s4 }
  0xf9   :  { %p730_p12 = pnand %p728_p11, %p725_p10 }
  0xfb   :  { %733 = shalt.err (!%p730_p12)
}
  0xfc   :  { %s807_s0 = smov 16   ;;  %s734_s20 = scalar_lea.vmem %s1037_s10, 32 }
  0xfd   :  { %568 = dma.vmem_to_hbm [thread:$0]  %s563_s3, 32, %s1147_s4, [#allocation4], %s807_s0, %s807_s0, %s804_s26  }
  0xfe   :  { %p735_p13 = scmp.ne.s32.totalorder %s1037_s10, %s734_s20  ;;  %p739_p0 = scmp.lt.s32.totalorder %s1037_s10, %s1037_s10 }
  0xff   :  { %p740_p1 = scmp.lt.s32.totalorder %s734_s20, %s734_s20 }
 0x101   :  { %p741_p2 = por %p740_p1, %p739_p0 }
 0x103   :  { %p742_p3 = pnand %p741_p2, %p735_p13 }
 0x105   :  { %745 = shalt.err (!%p742_p3)
}
 0x106   :  { %s746_s25 = scalar_lea.hbm %s1148_s5, 32 }
 0x107   :  { %p747_p4 = scmp.ne.s32.totalorder %s1148_s5, %s746_s25  ;;  %p750_p5 = scmp.lt.u32.totalorder %s746_s25, %s1148_s5 }
 0x109   :  { %p752_p6 = pnand %p750_p5, %p747_p4 }
 0x10b   :  { %755 = shalt.err (!%p752_p6)
}
 0x10c   :  { %580 = dma.vmem_to_hbm [thread:$0]  %s1037_s10, 32, %s1148_s5, [#allocation11], %s807_s0, %s807_s0, %s804_s26   ;;  %v189_v52 = vpop.permute.xlu1 %188  ;;  %v187_v53 = vpop.permute.xlu0 %186  ;;  %v87_v62 = vld [vmem:[#allocation7] sm:$0xff]  ;;  %vm215_vm7 = vcmask 7168   ;;  %v88_v4 = vld [vmem:[#allocation7 + $0x8] sm:$0x3f] }
 0x10d   :  { %s64_s7 = sld [smem:[#allocation2]]  ;;  %s1077_s9 = sld [smem:[#allocation2 + $0x3]]  ;;  %v91_v63 = vld [vmem:[#allocation7 + $0x2] sm:$0xff]  ;;  %v92_v5 = vld [vmem:[#allocation7 + $0xa] sm:$0x3f]  ;;  %v344_v16 = vld [vmem:[#allocation7 + $0x10] sm:$0xff] }
 0x10e   :  { %s614_s8 = sld [smem:[#allocation2 + $0x8]]  ;;  %s1079_s2 = sld [smem:[#allocation2 + $0x1]]  ;;  %v93_v8 = vsub.f32 %v91_v63, %v87_v62  ;;  %v94_v14 = vsub.f32 %v92_v5, %v88_v4  ;;  %v348_v17 = vld [vmem:[#allocation7 + $0x12] sm:$0xff]  ;;  %vm198_vm8 = vcmask 515072   ;;  %v349_v32 = vld [vmem:[#allocation7 + $0x1a] sm:$0x3f] }
 0x10f   :  { %s1081_s10 = sld [smem:[#allocation2 + $0x4]]  ;;  %s81_s12 = smul.f32 0.5, %s938_s21  ;;  %v350_v24 = vsub.f32 %v348_v17, %v344_v16  ;;  %v345_v31 = vld [vmem:[#allocation7 + $0x18] sm:$0x3f] }
 0x110   :  { %v195_v54 = vpop.permute.xlu1 %194  ;;  %v193_v55 = vpop.permute.xlu0 %192  ;;  %s1084_s13 = sld [smem:[#allocation2 + $0xb]]  ;;  %s337_s14 = smul.f32 0.5, %s953_s23  ;;  %v351_v48 = vsub.f32 %v349_v32, %v345_v31  ;;  %v613_v4 = vld [vmem:[#allocation6 + $0x1] ss:$0 sm:$0xff] }
 0x111   :  { %s1087_s15 = sld [smem:[#allocation2 + $0xc]]  ;;  %v95_v15 = vstv %s81_s12  ;;  %s1096_s17 = sld [smem:[#allocation2 + $0x9]]  ;;  %v200_v25 = vsel %vm198_vm8, %v189_v52, %v195_v54  ;;  %v199_v27 = vsel %vm198_vm8, %v187_v53, %v193_v55 }
 0x112   :  { %v96_v23 = vmul.f32 %v95_v15, %v93_v8  ;;  %v97_v26 = vmul.f32 %v95_v15, %v94_v14  ;;  %v352_v28 = vstv %s337_s14  ;;  %s808_s24 = smov [#allocation12]  }
 0x113   :  { %s75_s3 = smul.f32 2.0, %s64_s7  ;;  %v353_v54 = vmul.f32 %v352_v28, %v350_v24  ;;  %v354_v63 = vmul.f32 %v352_v28, %v351_v48  ;;  %s586_s25 = sshll.u32 %s808_s24, 4  ;;  %s587_s25 = int_to_ptr.vmem [resolvable:$true] %s586_s25 }
 0x114   :  { %s331_s11 = smul.f32 2.0, %s614_s8  ;;  %v235_v49 = vsub.f32 %v97_v26, %v200_v25  ;;  %s756_s27 = scalar_lea.vmem %s587_s25, 32 }
 0x115   :  { %s76_s5 = smul.f32 %s75_s3, %s75_s3  ;;  %p757_p7 = scmp.ne.s32.totalorder %s587_s25, %s756_s27 }
 0x116   :  { %s246_s16 = smul.f32 2.0, %s1077_s9  ;;  %p761_p8 = scmp.lt.s32.totalorder %s587_s25, %s587_s25 }
 0x117   :  { %v236_v12 = vstv %s76_s5  ;;  %s1092_s21 = smul.f32 %s331_s11, %s331_s11  ;;  %p762_p9 = scmp.lt.s32.totalorder %s756_s27, %s756_s27 }
 0x118   :  { %s77_s23 = smul.f32 %s1079_s2, %s1079_s2  ;;  %v247_v22 = vstv %s246_s16 }
 0x119   :  { %s252_s18 = smul.f32 2.0, %s1081_s10  ;;  %v487_v29 = vstv %s1092_s21  ;;  %v249_v34 = vmul.f32 %v247_v22, %v884_v1  ;;  %v248_v36 = vmul.f32 %v247_v22, %v880_v0  ;;  %v234_v0 = vsub.f32 %v96_v23, %v199_v27  ;;  %p763_p10 = por %p762_p9, %p761_p8 }
 0x11a   :  { %v241_v30 = vstv %s77_s23  ;;  %s497_s19 = smul.f32 2.0, %s1084_s13 }
 0x11b   :  { %s503_s20 = smul.f32 2.0, %s1087_s15  ;;  %v253_v47 = vstv %s252_s18  ;;  %p764_p11 = pnand %p763_p10, %p757_p7 }
 0x11c   :  { %s333_s22 = smul.f32 %s1096_s17, %s1096_s17  ;;  %v498_v1 = vstv %s497_s19 }
 0x11d   :  { %v504_v55 = vstv %s503_s20 }
 0x11e   :  { %v492_v5 = vstv %s333_s22  ;;  %v505_v28 = vmul.f32 %v504_v55, %v974_v10 }
 0x142   :  { %v206_v56 = vpop.permute.xlu1 %205  ;;  %v204_v57 = vpop.permute.xlu0 %203 }
 0x146   :  { %v212_v58 = vpop.permute.xlu1 %211  ;;  %v210_v59 = vpop.permute.xlu0 %209 }
 0x147   :  { %v217_v9 = vsel %vm215_vm7, %v206_v56, %v212_v58  ;;  %v216_v13 = vsel %vm215_vm7, %v204_v57, %v210_v59  ;;  %v612_v56 = vld [vmem:[#allocation6] ss:$0 sm:$0xff]  ;;  %v254_v59 = vmul.f32 %v253_v47, %v949_v45 }
 0x148   :  { %v238_v20 = vmul.f32 %v236_v12, %v217_v9  ;;  %v237_v21 = vmul.f32 %v236_v12, %v216_v13  ;;  %v263_v8 = vmul.f32 %v612_v56, %v235_v49  ;;  %v262_v9 = vmul.f32 %v612_v56, %v234_v0 }
 0x14a   :  { %v458_v60 = vpop.permute.xlu1 %457  ;;  %v456_v61 = vpop.permute.xlu0 %455  ;;  %v240_v37 = vsub.f32 %v97_v26, %v238_v20  ;;  %v239_v38 = vsub.f32 %v96_v23, %v237_v21 }
 0x14e   :  { %v464_v6 = vpop.permute.xlu1 %463  ;;  %v462_v7 = vpop.permute.xlu0 %461 }
 0x14f   :  { %v468_v41 = vsel %vm215_vm7, %v458_v60, %v464_v6  ;;  %v467_v42 = vsel %vm215_vm7, %v456_v61, %v462_v7  ;;  %v255_v60 = vmul.f32 %v253_v47, %v951_v46  ;;  %v500_v6 = vmul.f32 %v498_v1, %v890_v3 }
 0x150   :  { %v489_v57 = vmul.f32 %v487_v29, %v468_v41  ;;  %v488_v58 = vmul.f32 %v487_v29, %v467_v42  ;;  %v499_v7 = vmul.f32 %v498_v1, %v888_v2  ;;  %v506_v29 = vmul.f32 %v504_v55, %v976_v11 }
 0x152   :  { %v223_v18 = vpop.permute.xlu1 %222  ;;  %v221_v19 = vpop.permute.xlu0 %220  ;;  %v491_v16 = vsub.f32 %v354_v63, %v489_v57  ;;  %v490_v17 = vsub.f32 %v353_v54, %v488_v58 }
 0x156   :  { %v229_v33 = vpop.permute.xlu1 %228  ;;  %v227_v35 = vpop.permute.xlu0 %226 }
 0x157   :  { %v233_v39 = vsel %vm215_vm7, %v223_v18, %v229_v33  ;;  %v232_v40 = vsel %vm215_vm7, %v221_v19, %v227_v35 }
 0x158   :  { %v243_v43 = vmul.f32 %v241_v30, %v233_v39  ;;  %v242_v44 = vmul.f32 %v241_v30, %v232_v40 }
 0x15a   :  { %v245_v50 = vadd.f32 %v243_v43, %v240_v37  ;;  %v244_v51 = vadd.f32 %v242_v44, %v239_v38  ;;  %v474_v52 = vpop.permute.xlu1 %473  ;;  %v472_v53 = vpop.permute.xlu0 %471 }
 0x15c   :  { %v251_v61 = vadd.f32 %v249_v34, %v245_v50  ;;  %v250_v62 = vadd.f32 %v248_v36, %v244_v51 }
 0x15e   :  { %v257_v12 = vsub.f32 %v251_v61, %v255_v60  ;;  %v256_v13 = vsub.f32 %v250_v62, %v254_v59  ;;  %v480_v14 = vpop.permute.xlu1 %479  ;;  %v478_v15 = vpop.permute.xlu0 %477 }
 0x15f   :  { %v484_v45 = vsel %vm215_vm7, %v474_v52, %v480_v14  ;;  %v483_v46 = vsel %vm215_vm7, %v472_v53, %v478_v15 }
 0x160   :  { %v269_v18 = vmul.f32 %v613_v4, %v257_v12  ;;  %v268_v19 = vmul.f32 %v613_v4, %v256_v13  ;;  %v494_v20 = vmul.f32 %v492_v5, %v484_v45  ;;  %v493_v21 = vmul.f32 %v492_v5, %v483_v46 }
 0x162   :  { %v271_v22 = vadd.f32 %v269_v18, %v263_v8  ;;  %v270_v3 = vadd.f32 %v268_v19, %v262_v9  ;;  %v496_v23 = vadd.f32 %v494_v20, %v491_v16  ;;  %v495_v2 = vadd.f32 %v493_v21, %v490_v17  ;;  %v442_v24 = vpop.permute.xlu1 %441  ;;  %v440_v26 = vpop.permute.xlu0 %439 }
 0x164   :  { %v273_v30 = vmul.f32 %v271_v22, %v271_v22  ;;  %v272_v31 = vmul.f32 %v270_v3, %v270_v3  ;;  %v502_v32 = vadd.f32 %v500_v6, %v496_v23  ;;  %v501_v25 = vadd.f32 %v499_v7, %v495_v2 }
 0x166   :  { %v508_v27 = vsub.f32 %v502_v32, %v506_v29  ;;  %v507_v33 = vsub.f32 %v501_v25, %v505_v28  ;;  %v448_v34 = vpop.permute.xlu1 %447  ;;  %v277_v35 = vsel %vm276_vm4, %v273_v30, 0.0  ;;  %v446_v36 = vpop.permute.xlu0 %445  ;;  %v275_v37 = vsel %vm274_vm5, %v272_v31, 0.0 }
 0x167   :  { %v452_v38 = vsel %vm198_vm8, %v442_v24, %v448_v34  ;;  %v451_v39 = vsel %vm198_vm8, %v440_v26, %v446_v36  ;;  %v278_v40 = vadd.f32 %v277_v35, %v275_v37 }
 0x168   :  { %v486_v10 = vsub.f32 %v354_v63, %v452_v38  ;;  %v485_v41 = vsub.f32 %v353_v54, %v451_v39  ;;  %v512_v43 = vmul.f32 %v613_v4, %v508_v27  ;;  %v511_v47 = vmul.f32 %v613_v4, %v507_v33 }
 0x169   :  { %v279_v11 = vrot.slane %v278_v40, 4 }
 0x16a   :  { %v510_v42 = vmul.f32 %v612_v56, %v486_v10  ;;  %v509_v44 = vmul.f32 %v612_v56, %v485_v41 }
 0x16b   :  { %v280_v48 = vadd.f32 %v279_v11, %v278_v40 }
 0x16c   :  { %v514_v1 = vadd.f32 %v512_v43, %v510_v42  ;;  %v513_v49 = vadd.f32 %v511_v47, %v509_v44 }
 0x16d   :  { %v281_v0 = vrot.slane %v280_v48, 2 }
 0x16e   :  { %v516_v50 = vmul.f32 %v514_v1, %v514_v1  ;;  %v515_v51 = vmul.f32 %v513_v49, %v513_v49 }
 0x16f   :  { %v282_v52 = vadd.f32 %v281_v0, %v280_v48 }
 0x170   :  { %v518_v53 = vsel %vm276_vm4, %v516_v50, 0.0  ;;  %v517_v55 = vsel %vm274_vm5, %v515_v51, 0.0 }
 0x171   :  { %v519_v57 = vadd.f32 %v518_v53, %v517_v55  ;;  %v283_v58 = vrot.slane %v282_v52, 1 }
 0x173   :  { %v520_v59 = vrot.slane %v519_v57, 4  ;;  %v284_v54 = vadd.f32 %v283_v58, %v282_v52 }
 0x175   :  { %v521_v60 = vadd.f32 %v520_v59, %v519_v57  ;;  %286 = vst.msk [vmem:[#allocation12] sm:$0x1] %vm285_vm6, %v284_v54 }
 0x177   :  { %v522_v56 = vrot.slane %v521_v60, 2 }
 0x179   :  { %v523_v61 = vadd.f32 %v522_v56, %v521_v60 }
 0x17b   :  { %v524_v62 = vrot.slane %v523_v61, 1 }
 0x17d   :  { %v525_v63 = vadd.f32 %v524_v62, %v523_v61 }
 0x17f   :  { %527 = vst.msk [vmem:[#allocation12 + $0x1] sm:$0x1] %vm285_vm6, %v525_v63 }
 0x180   :  { %767 = shalt.err (!%p764_p11)
}
 0x181   :  { %s768_s29 = scalar_lea.hbm %s1149_s6, 32 }
 0x182   :  { %p769_p12 = scmp.ne.s32.totalorder %s1149_s6, %s768_s29  ;;  %p772_p13 = scmp.lt.u32.totalorder %s768_s29, %s1149_s6 }
 0x184   :  { %p774_p0 = pnand %p772_p13, %p769_p12 }
 0x186   :  { %777 = shalt.err (!%p774_p0)
}
 0x187   :  { %592 = dma.vmem_to_hbm [thread:$0]  %s587_s25, 32, %s1149_s6, [#allocation11], %s807_s0, %s807_s0, %s804_s26  }
 0x188   :  { %784 = dma.done.wait [#allocation4], 32  }
 0x189   :  { %785 = vsyncadd [#allocation4], 4294967264 }
 0x18a   :  { %786 = dma.done.wait [#allocation11], 64  }
 0x18b   :  { %787 = vsyncadd [#allocation11], 4294967232 }
 0x18c   :  { %602 = vsyncpa [#allocation3], 1 }
 0x18d   :  { %603 = vsyncpa [#allocation8], 1 }
 0x18e   :  { %604 = vsyncpa [#allocation4], 1 }
 0x18f   :  { %605 = vsyncpa [#allocation11], 1 }
 0x190   :  { %606 = vsyncpa [#allocation5], 1 }

</bundles_post_ra>
